<compile_context>
chip_gen: v6e
topology: v6e:2x2x1
jax: 0.10.0
libtpu: 0.0.40
codegen_flags: <defaults>
</compile_context>

<pallas_src>
import jax
import jax.numpy as jnp
from jax import lax
from jax.experimental import pallas as pl
from jax.experimental.pallas import tpu as pltpu


def _round_up(n, m):
    return ((n + m - 1) // m) * m


def _segformer_mlp_kernel(x_ref, w_ref, b_ref, o_ref):
    # x_ref: (1, C, tn)  -- channels on sublanes, spatial positions on lanes
    # w_ref: (C, Ep)     -- full weight, resident across grid steps
    # b_ref: (1, Ep)     -- f32 bias
    # o_ref: (1, tn, Ep) -- lane-dense output tile
    #
    # Contract the channel (sublane) axis directly: (C, tn)^T @ (C, Ep) -> (tn, Ep).
    acc = lax.dot_general(
        x_ref[0],
        w_ref[...],
        dimension_numbers=(((0,), (0,)), ((), ())),
        preferred_element_type=jnp.float32,
    )
    o_ref[0] = (acc + b_ref[...]).astype(o_ref.dtype)


def mlp_forward(x_nchw, weight, bias, *, tn=1024, matmul_dtype=None,
                vmem_budget_bytes=36 * 1024 * 1024):
    """SegFormer MLP forward.

    x_nchw : (B, C, H, W)
    weight : (E, C)   (torch nn.Linear.weight convention)
    bias   : (E,)
    returns: (B, H*W, E) in x's dtype.

    matmul_dtype: optional (e.g. jnp.bfloat16) to halve activation/weight HBM traffic;
                  accumulation stays f32.
    """
    B, C, H, W = x_nchw.shape
    E, C_w = weight.shape
    assert C_w == C
    HW = H * W

    out_dtype = x_nchw.dtype
    compute_dtype = jnp.dtype(matmul_dtype) if matmul_dtype is not None else jnp.dtype(out_dtype)

    # Native (B, C, HW) layout -- a contiguous reshape, no HBM transpose/pad pass.
    x_bcn = x_nchw.reshape(B, C, HW)
    if x_bcn.dtype != compute_dtype:
        x_bcn = x_bcn.astype(compute_dtype)

    # Lane-dense output: pad embed dim up to a multiple of 128 only if needed.
    Ep = _round_up(E, 128)
    w_ke = jnp.transpose(weight, (1, 0)).astype(compute_dtype)  # (C, E) -- tiny, one-time
    if Ep != E:
        w_ke = jnp.pad(w_ke, ((0, 0), (0, Ep - E)))
        b_pad = jnp.pad(bias, (0, Ep - E))
    else:
        b_pad = bias
    b_2d = b_pad.reshape(1, Ep).astype(jnp.float32)

    # Spatial tile: multiple of 128 lanes, as large as the VMEM budget allows.
    tn = max(128, min(_round_up(int(tn), 128), _round_up(HW, 128)))
    in_item = jnp.dtype(compute_dtype).itemsize
    out_item = jnp.dtype(out_dtype).itemsize

    def _vmem_bytes(t):
        # double-buffered x tile + double-buffered out tile + (resident) weight + bias
        return (2 * t * C * in_item + 2 * t * Ep * out_item
                + 2 * C * Ep * in_item + 2 * Ep * 4)

    while tn > 256 and _vmem_bytes(tn) > vmem_budget_bytes:
        tn -= 256
    tn = max(128, tn)

    # Ragged spatial tail handled by Pallas' masked boundary blocks -- no HBM pad pass.
    grid = (B, pl.cdiv(HW, tn))

    flops = 2.0 * B * HW * C * Ep
    bytes_accessed = (B * HW * C * in_item       # activations read
                      + C * Ep * in_item         # weight read
                      + Ep * 4                   # bias read
                      + B * HW * Ep * out_item)  # output write

    out_full = pl.pallas_call(
        _segformer_mlp_kernel,
        out_shape=jax.ShapeDtypeStruct((B, HW, Ep), out_dtype),
        grid_spec=pltpu.PrefetchScalarGridSpec(
            num_scalar_prefetch=0,
            grid=grid,
            in_specs=[
                pl.BlockSpec((1, C, tn), lambda b, i: (b, 0, i)),  # activations (B,C,HW)
                pl.BlockSpec((C, Ep), lambda b, i: (0, 0)),        # full weight, resident
                pl.BlockSpec((1, Ep), lambda b, i: (0, 0)),        # bias
            ],
            out_specs=pl.BlockSpec((1, tn, Ep), lambda b, i: (b, i, 0)),
        ),
        compiler_params=pltpu.CompilerParams(
            dimension_semantics=("parallel", "parallel"),
            vmem_limit_bytes=48 * 1024 * 1024,
        ),
        cost_estimate=pl.CostEstimate(
            flops=int(flops), transcendentals=0, bytes_accessed=int(bytes_accessed)),
    )(x_bcn, w_ke, b_2d)

    out = out_full
    if Ep != E:
        out = out[:, :, :E]
    return out


if __name__ == "__main__":
    # Small shapes consistent with the module: input_dim=C=32, embed_dim=E=64.
    B, C, H, W = 2, 32, 16, 16
    E = 64

    key = jax.random.PRNGKey(0)
    kx, kw, kb = jax.random.split(key, 3)
    x = jax.random.normal(kx, (B, C, H, W), dtype=jnp.float32)
    # torch nn.Linear conventions: weight (E, C), bias (E,)
    weight = jax.random.normal(kw, (E, C), dtype=jnp.float32) * 0.02
    bias = jax.random.normal(kb, (E,), dtype=jnp.float32) * 0.01

    out = mlp_forward(x, weight, bias)
    out = jax.block_until_ready(out)

    # Pure-JAX reference.
    x_bnc = jnp.transpose(x.reshape(B, C, H * W), (0, 2, 1))
    ref = jnp.einsum("bnc,ec->bne", x_bnc, weight) + bias
    assert out.shape == (B, H * W, E)
    assert jnp.allclose(out, ref, atol=1e-4, rtol=1e-4)

    print("KERNEL_OK")
</pallas_src>

<mosaic_0001>
module attributes {stable_mosaic.version = 11 : i64} {
  func.func @_segformer_mlp_kernel(%arg0: i32, %arg1: i32, %arg2: memref<1x32x256xf32, #tpu.memory_space<vmem>>, %arg3: memref<32x128xf32, #tpu.memory_space<vmem>>, %arg4: memref<1x128xf32, #tpu.memory_space<vmem>>, %arg5: memref<1x256x128xf32, #tpu.memory_space<vmem>>) attributes {dimension_semantics = [#tpu.dimension_semantics<parallel>, #tpu.dimension_semantics<parallel>], iteration_bounds = array<i64: 2, 1>, scalar_prefetch = 0 : i64, scratch_operands = 0 : i64, tpu.core_type = #tpu.core_type<tc>, window_params = [{transform_indices = @transform_0, window_bounds = array<i64: 1, 32, 256>}, {pipeline_mode = #tpu.pipeline_mode<synchronous>, transform_indices = @transform_1, window_bounds = array<i64: 32, 128>}, {pipeline_mode = #tpu.pipeline_mode<synchronous>, transform_indices = @transform_2, window_bounds = array<i64: 1, 128>}, {transform_indices = @transform_3, window_bounds = array<i64: 1, 256, 128>}]} {
    %c0 = arith.constant 0 : index
    %c0_0 = arith.constant 0 : index
    %c0_1 = arith.constant 0 : index
    %0 = vector.load %arg2[%c0, %c0_0, %c0_1] : memref<1x32x256xf32, #tpu.memory_space<vmem>>, vector<1x32x256xf32>
    %1 = vector.shape_cast %0 : vector<1x32x256xf32> to vector<32x256xf32>
    %c0_2 = arith.constant 0 : index
    %c0_3 = arith.constant 0 : index
    %2 = vector.load %arg3[%c0_2, %c0_3] : memref<32x128xf32, #tpu.memory_space<vmem>>, vector<32x128xf32>
    %cst = arith.constant dense<0.000000e+00> : vector<256x128xf32>
    %3 = tpu.matmul %1, %2, %cst {dimension_numbers = #tpu.dot_dimension_numbers<[0], [0], [1], [1], [0, 1, 1, 1], [], []>} : vector<32x256xf32>, vector<32x128xf32>, vector<256x128xf32> -> vector<256x128xf32>
    %c0_4 = arith.constant 0 : index
    %c0_5 = arith.constant 0 : index
    %4 = vector.load %arg4[%c0_4, %c0_5] : memref<1x128xf32, #tpu.memory_space<vmem>>, vector<1x128xf32>
    %5 = vector.broadcast %4 : vector<1x128xf32> to vector<256x128xf32>
    %6 = arith.addf %3, %5 : vector<256x128xf32>
    %c0_6 = arith.constant 0 : index
    %c0_7 = arith.constant 0 : index
    %c0_8 = arith.constant 0 : index
    %7 = vector.load %arg5[%c0_6, %c0_7, %c0_8] : memref<1x256x128xf32, #tpu.memory_space<vmem>>, vector<1x256x128xf32>
    %8 = vector.shape_cast %7 : vector<1x256x128xf32> to vector<256x128xf32>
    %9 = vector.shape_cast %6 : vector<256x128xf32> to vector<1x256x128xf32>
    tpu.vector_store %arg5[%c0_6, %c0_7, %c0_8], %9 {strides = array<i32>} : memref<1x256x128xf32, #tpu.memory_space<vmem>>, vector<1x256x128xf32>,
    return
  }
  func.func @transform_0(%arg0: i32, %arg1: i32) -> (i32, i32, i32) {
    %c0_i32 = arith.constant 0 : i32
    %c0_i32_0 = arith.constant 0 : i32
    return %arg0, %c0_i32, %arg1 : i32, i32, i32
  }
  func.func @transform_1(%arg0: i32, %arg1: i32) -> (i32, i32) {
    %c0_i32 = arith.constant 0 : i32
    %c0_i32_0 = arith.constant 0 : i32
    %c0_i32_1 = arith.constant 0 : i32
    return %c0_i32, %c0_i32_0 : i32, i32
  }
  func.func @transform_2(%arg0: i32, %arg1: i32) -> (i32, i32) {
    %c0_i32 = arith.constant 0 : i32
    %c0_i32_0 = arith.constant 0 : i32
    %c0_i32_1 = arith.constant 0 : i32
    return %c0_i32, %c0_i32_0 : i32, i32
  }
  func.func @transform_3(%arg0: i32, %arg1: i32) -> (i32, i32, i32) {
    %c0_i32 = arith.constant 0 : i32
    %c0_i32_0 = arith.constant 0 : i32
    return %arg0, %arg1, %c0_i32 : i32, i32, i32
  }
}

</mosaic_0001>

<bundles_post_ra>
// kernel: tpu_custom_call.1
= control target key start
LH: loop header
LB: loop body
LE: loop exit
PB: predicated region body
PF: predicated region fallthrough
CT: control target
= control target key end

     0   :  { %8 = vsyncpa [#allocation3], 0  ;;  %s1471_s0 = inlined_call_operand.hbm [shape: f32[2,32,256], index: 0, kind: input, shape index: {}]   ;;  %s1472_s1 = inlined_call_operand.hbm [shape: f32[32,128], index: 1, kind: input, shape index: {}]   ;;  %s1473_s2 = inlined_call_operand.vmem [shape: f32[1,128], index: 2, kind: input, shape index: {}]   ;;  %s1474_s3 = inlined_call_operand.hbm [shape: f32[2,256,128], index: 3, kind: output, shape index: {}]  }
   0x1   :  { %10 = vsyncpa [#allocation3 + $0x1], 0 }
   0x2   :  { %11 = vsyncpa [#allocation6], 0 }
   0x3   :  { %12 = vsyncpa [#allocation4], 0 }
   0x4   :  { %14 = vsyncpa [#allocation4 + $0x1], 0  ;;  %s1175_s12 = smov 0   ;;  %s1177_s13 = smov 0  }
   0x5   :  { %s1179_s14 = smov 0   ;;  %s1181_s15 = smov 0  }
   0x6   :  { %s1183_s16 = smov 0   ;;  %s1185_s17 = smov 0  }
   0x7 LB: > { %s774_s18 = sadd.s32 4294967295, %s1144_s17   ;;  %s775_s19 = sadd.s32 4294967294, %s1144_s17   ;;  %s1144_s17 = sphi %s1185_s17, %s20_s17   ;;  %s1140_s16 = sphi %s1183_s16, %s1492_s16   ;;  %s1136_s15 = sphi %s1181_s15, %s1491_s15   ;;  %s1132_s14 = sphi %s1179_s14, %s1490_s14   ;;  %s1128_s13 = sphi %s1177_s13, %s1489_s13   ;;  %s1124_s12 = sphi %s1175_s12, %s1488_s12  }
   0x8   : > { %p54_p0 = scmp.ne.s32.totalorder %s1128_s13, %s1124_s12  ;;  %p1209_p1 = scmp.eq.s32.totalorder %s774_s18, 0 }
   0x9   : > { %p1213_p2 = scmp.eq.s32.totalorder %s774_s18, 1  ;;  %p128_p3 = scmp.eq.s32.totalorder %s775_s19, 1 }
   0xa   : > { %p1219_p4 = por %p1209_p1, %p54_p0  ;;  %p776_p5 = scmp.ge.s32.totalorder %s1144_s17, 1 }
   0xb   : > { %p1224_p6 = por %p128_p3, %p54_p0  ;;  %p135_p7 = scmp.lt.s32.totalorder %s1144_s17, 3 }
   0xc   : > { %s1478_s22 = scalar_select %p1219_p4, 1, 0 }
   0xd   : > { %s1479_s23 = scalar_select %p1224_p6, 1, 0 }
   0xe   : > { %p1229_p8 = pnand %p776_p5, %p135_p7  ;;  %s1146_s25 = smov [#allocation5]  }
   0xf   : > { %s147_s26 = sshll.u32 %s1146_s25, 4  ;;  %s32_s28 = sadd.s32 1, %s1140_s16  ;;  %s148_s26 = int_to_ptr.vmem [resolvable:$true] %s147_s26 }
  0x10   : > { %p934_p9 = pneg %p1229_p8  ;;  %s1017_s29 = scalar_lea.vmem %s148_s26, 512 }
  0x11   : > { %p1018_p13 = scmp.ne.s32.totalorder %s148_s26, %s1017_s29  ;;  %p1025_p5 = scmp.lt.s32.totalorder %s148_s26, %s148_s26 }
  0x12   : > { %p1238_p11 = pnand %p934_p9, %p1209_p1  ;;  %p1026_p7 = scmp.lt.s32.totalorder %s1017_s29, %s1017_s29 }
  0x14   : > { %p1008_p12 = pneg %p1238_p11  ;;  %p1027_p6 = por %p1026_p7, %p1025_p5 }
  0x16   : > { %p1020_p0 = pnand %p1018_p13, %p1008_p12 }
  0x18   : > { %p1021_p3 = pneg %p1020_p0 }
  0x1a   : > { %p1028_p4 = pnand %p1027_p6, %p1021_p3 }
  0x1c   : > { %1031 = shalt.err (!%p1028_p4)
}
  0x1d   : > { %s1147_s30 = smov 128   ;;  %s1148_s4 = smov 8  }
  0x1e   : > { %937 = dma.hbm_to_vmem [thread:$0]  (!%p1238_p11), %s1472_s1, 512, %s148_s26, [#allocation6], %s1147_s30, %s1147_s30, %s1148_s4  }
  0x1f   : > { %p34_p6 = scmp.ge.s32.totalorder %s32_s28, 2  ;;  %s41_s7 = sadd.s32 1, %s1132_s14 }
  0x20   : > { %p48_p4 = scmp.ne.s32.totalorder %s1132_s14, %s1128_s13  ;;  %p49_p9 = scmp.eq.s32.totalorder %s1144_s17, 0 }
  0x21   : > { %s1494_s28 = smov (%p34_p6, %s32_s28), 0  ;;  %p947_p0 = scmp.lt.s32.totalorder %s1144_s17, 2 }
  0x22   : > { %p1256_p12 = por %p49_p9, %p48_p4  ;;  %p1262_p13 = por %p1213_p2, %p48_p4 }
  0x23   : > { %s36_s10 = ssub.s32 %s1140_s16, %s1494_s28  ;;  %s164_s11 = sand.u32 1, %s1132_s14  }
  0x24   : > { %p39_p11 = scmp.eq.s32.totalorder %s36_s10, 0  ;;  %s779_s18 = sshll.u32 %s164_s11, 6 }
  0x25   : > { %s824_s25 = sshll.u32 %s1140_s16, 10  ;;  %s168_s30 = scalar_lea.vmem [#allocation2], %s779_s18 }
  0x26   : > { %s1271_s19 = scalar_select %p39_p11, %s1132_s14, %s41_s7  }
  0x27   : > { %s176_s29 = scalar_lea.hbm %s1471_s0, %s824_s25  ;;  %s177_s4 = sshll.u32 %s168_s30, 4  ;;  %s178_s4 = int_to_ptr.vmem [resolvable:$true] %s177_s4 }
  0x28   : > { %p1279_p2 = pnand %p947_p0, %p1256_p12  ;;  %s165_s5 = scalar_lea.sflag [#allocation3], %s164_s11 }
  0x29   : > { %s1045_s6 = scalar_lea.vmem %s178_s4, 1024  ;;  %s1149_s7 = smov [#allocation2]  }
  0x2a   : > { %p1034_p3 = pneg %p1279_p2  ;;  %p1046_p5 = scmp.ne.s32.totalorder %s178_s4, %s1045_s6 }
  0x2b   : > { %s1050_s10 = sshll.u32 %s1149_s7, 4  ;;  %s1051_s10 = int_to_ptr.vmem [resolvable:$false] %s1050_s10 }
  0x2c   : > { %p1048_p7 = pnand %p1046_p5, %p1034_p3  ;;  %s1052_s25 = scalar_lea.vmem %s1051_s10, 2048 }
  0x2d   : > { %p1053_p4 = scmp.lt.s32.totalorder %s178_s4, %s1051_s10  ;;  %p1054_p9 = scmp.lt.s32.totalorder %s1052_s25, %s1045_s6 }
  0x2e   : > { %p1049_p6 = pneg %p1048_p7 }
  0x2f   : > { %p1055_p11 = por %p1054_p9, %p1053_p4 }
  0x31   : > { %p1056_p10 = pnand %p1055_p11, %p1049_p6 }
  0x33   : > { %1059 = shalt.err (!%p1056_p10)
}
  0x34   : > { %s1150_s8 = smov 256   ;;  %s1151_s18 = smov 16  }
  0x35   : > { %941 = dma.hbm_to_vmem [thread:$0]  (!%p1279_p2), %s176_s29, 1024, %s178_s4, %s165_s5, %s1150_s8, %s1150_s8, %s1151_s18  }
  0x36   : > { %189 = sbr.rel (%p1229_p8) target bundleno = 459 (0x1cb), region = 32  ;;  %s1290_s11 = sand.u32 (!%p1229_p8), 1, %s1128_s13  }
  0x37   : > { %s783_s26 = sshll.u32 (!%p1229_p8), %s1290_s11, 6  ;;  %s192_s27 = scalar_lea.sflag (!%p1229_p8), [#allocation3], %s1290_s11 }
  0x38   : > { %s1294_s30 = scalar_lea.vmem (!%p1229_p8), [#allocation2], %s783_s26  ;;  %p1485_p12 = scmp.ne.s32.totalorder (!%p1229_p8), %s1478_s22, 0 }
  0x3b   : > { %1111 = dma.done.wait (%p1485_p12), %s192_s27, 1024  }
  0x3c   : > { %1113 = vsyncadd (%p1485_p12), %s192_s27, 4294966272 }
  0x3d   : > { %1115 = dma.done.wait (%p1209_p1), [#allocation6], 512  }
  0x3e   : > { %1117 = vsyncadd (%p1209_p1), [#allocation6], 4294966784  ;;  %v225_v0 = vld [vmem:[%s1294_s30 + $0x8] sm:$0xff]  ;;  %v224_v1 = vld [vmem:[%s1294_s30] sm:$0xff]  ;;  %vm307_vm0 = vcmask 261120   ;;  %s785_s20 = sshll.u32 %s1290_s11, 8 }
  0x3f   : > { %275 = vxpose.xlu1.b32.start [1/4] (short) %v225_v0, 128  ;;  %243 = vxpose.xlu0.b32.start [1/4] (short) %v224_v1, 128  ;;  %v227_v2 = vld [vmem:[%s1294_s30 + $0x18] sm:$0xff]  ;;  %v226_v3 = vld [vmem:[%s1294_s30 + $0x10] sm:$0xff]  ;;  %v233_v6 = vld [vmem:[#allocation5 + $0x8] sm:$0xff]  ;;  %s1352_s29 = scalar_lea.vmem [#allocation7], %s785_s20  ;;  %s825_s4 = sshll.u32 %s1136_s15, 12 }
  0x40   : > { %v235_v4 = vld [vmem:[#allocation5 + $0x18] sm:$0xff]  ;;  %v234_v5 = vld [vmem:[#allocation5 + $0x10] sm:$0xff]  ;;  %v229_v7 = vld [vmem:[%s1294_s30 + $0x28] sm:$0xff]  ;;  %s677_s21 = sshll.u32 %s1352_s29, 4  ;;  %s1415_s7 = scalar_lea.hbm %s1474_s3, %s825_s4  ;;  %s1417_s21 = int_to_ptr.vmem [resolvable:$true] %s677_s21 }
  0x41   : > { %862 = vmatprep.subr.mxu0 %v235_v4  ;;  %918 = vmatprep.subr.mxu1 %v235_v4  ;;  %v228_v8 = vld [vmem:[%s1294_s30 + $0x20] sm:$0xff]  ;;  %v231_v10 = vld [vmem:[%s1294_s30 + $0x38] sm:$0xff]  ;;  %v230_v11 = vld [vmem:[%s1294_s30 + $0x30] sm:$0xff]  ;;  %s662_s15 = scalar_lea.sflag [#allocation4], %s1290_s11  ;;  %s1060_s10 = scalar_lea.vmem %s1417_s21, 4096 }
  0x42   : > { %863 = vmatpush3.msra.mxu0 %v235_v4  ;;  %922 = vmatpush3.msra.mxu1 %v235_v4  ;;  %v232_v9 = vld [vmem:[#allocation5] sm:$0xff]  ;;  %p1061_p1 = scmp.ne.s32.totalorder %s1417_s21, %s1060_s10  ;;  %s1152_s25 = smov [#allocation7]  }
  0x43   : > { %276 = vxpose.xlu1.b32.cont [2/4] (short) %v227_v2, 128  ;;  %244 = vxpose.xlu0.b32.cont [2/4] (short) %v226_v3, 128  ;;  %v1348_v44 = vld [vmem:[%s1473_s2] ss:$0 sm:$0xff]  ;;  %s1064_s8 = sshll.u32 %s1152_s25, 4  ;;  %s1065_s8 = int_to_ptr.vmem [resolvable:$false] %s1064_s8 }
  0x44   : > { %864 = vmatprep.subr.mxu0 %v234_v5  ;;  %919 = vmatprep.subr.mxu1 %v234_v5  ;;  %p1062_p8 = pnand %p1061_p1, %p1262_p13  ;;  %s1066_s18 = scalar_lea.vmem %s1065_s8, 8192 }
  0x45   : > { %865 = vmatpush3.msra.mxu0 %v234_v5  ;;  %923 = vmatpush3.msra.mxu1 %v234_v5  ;;  %p1067_p0 = scmp.lt.s32.totalorder %s1417_s21, %s1065_s8  ;;  %p1068_p2 = scmp.lt.s32.totalorder %s1066_s18, %s1060_s10 }
  0x46   : > { %866 = vmatprep.subr.mxu0 %v233_v6  ;;  %920 = vmatprep.subr.mxu1 %v233_v6  ;;  %p1063_p10 = pneg %p1062_p8 }
  0x47   : > { %277 = vxpose.xlu1.b32.cont [3/4] (short) %v229_v7, 128  ;;  %245 = vxpose.xlu0.b32.cont [3/4] (short) %v228_v8, 128  ;;  %p1069_p3 = por %p1068_p2, %p1067_p0 }
  0x48   : > { %867 = vmatpush3.msra.mxu0 %v233_v6  ;;  %924 = vmatpush3.msra.mxu1 %v233_v6 }
  0x49   : > { %868 = vmatprep.subr.mxu0 %v232_v9  ;;  %921 = vmatprep.subr.mxu1 %v232_v9  ;;  %p1070_p5 = pnand %p1069_p3, %p1063_p10 }
  0x4a   : > { %869 = vmatpush3.msra.mxu0 %v232_v9  ;;  %925 = vmatpush3.msra.mxu1 %v232_v9 }
  0x4b   : > { %278 = vxpose.xlu1.b32.end [4/4] (short) %v231_v10, 128  ;;  %246 = vxpose.xlu0.b32.end [4/4] (short) %v230_v11, 128 }
  0xbb   : > { %v291_v12 = vpop.trf.xlu1  ;;  %v259_v13 = vpop.trf.xlu0 }
  0xbc   : > { %870 = vmatprep.mubr.msk.f32.mxu0 %vm307_vm0, %v259_v13  ;;  %894 = vmatprep.mubr.msk.f32.mxu1 %vm307_vm0, %v291_v12 }
  0xbf   : > { %v292_v14 = vpop.trf.xlu1  ;;  %v260_v15 = vpop.trf.xlu0 }
  0xc0   : > { %871 = vmatmul.mubr.msk.f32.vlgmr.msra.gmra.mxu0 %vm307_vm0, %v260_v15  ;;  %895 = vmatmul.mubr.msk.f32.vlgmr.msra.gmra.mxu1 %vm307_vm0, %v292_v14 }
  0xc3   : > { %v293_v16 = vpop.trf.xlu1  ;;  %v261_v17 = vpop.trf.xlu0 }
  0xc4   : > { %873 = vmatprep.mubr.msk.f32.mxu0 %vm307_vm0, %v261_v17  ;;  %897 = vmatprep.mubr.msk.f32.mxu1 %vm307_vm0, %v293_v16 }
  0xc7   : > { %v294_v18 = vpop.trf.xlu1  ;;  %v262_v19 = vpop.trf.xlu0 }
  0xc8   : > { %874 = vmatmul.mubr.msk.f32.gmra.mxu0 %vm307_vm0, %v262_v19  ;;  %898 = vmatmul.mubr.msk.f32.gmra.mxu1 %vm307_vm0, %v294_v18 }
  0xcb   : > { %v295_v20 = vpop.trf.xlu1  ;;  %v263_v21 = vpop.trf.xlu0 }
  0xcc   : > { %876 = vmatprep.mubr.msk.f32.mxu0 %vm307_vm0, %v263_v21  ;;  %900 = vmatprep.mubr.msk.f32.mxu1 %vm307_vm0, %v295_v20 }
  0xcf   : > { %v296_v22 = vpop.trf.xlu1  ;;  %v264_v23 = vpop.trf.xlu0 }
  0xd0   : > { %877 = vmatmul.mubr.msk.f32.gmra.mxu0 %vm307_vm0, %v264_v23  ;;  %901 = vmatmul.mubr.msk.f32.gmra.mxu1 %vm307_vm0, %v296_v22 }
  0xd3   : > { %v297_v24 = vpop.trf.xlu1  ;;  %v265_v25 = vpop.trf.xlu0 }
  0xd4   : > { %879 = vmatprep.mubr.msk.f32.mxu0 %vm307_vm0, %v265_v25  ;;  %903 = vmatprep.mubr.msk.f32.mxu1 %vm307_vm0, %v297_v24 }
  0xd7   : > { %v298_v26 = vpop.trf.xlu1  ;;  %v266_v27 = vpop.trf.xlu0 }
  0xd8   : > { %880 = vmatmul.mubr.msk.f32.gmra.mxu0 %vm307_vm0, %v266_v27  ;;  %904 = vmatmul.mubr.msk.f32.gmra.mxu1 %vm307_vm0, %v298_v26 }
  0xdb   : > { %v299_v28 = vpop.trf.xlu1  ;;  %v267_v29 = vpop.trf.xlu0 }
  0xdc   : > { %882 = vmatprep.mubr.msk.f32.mxu0 %vm307_vm0, %v267_v29  ;;  %906 = vmatprep.mubr.msk.f32.mxu1 %vm307_vm0, %v299_v28 }
  0xdf   : > { %v300_v30 = vpop.trf.xlu1  ;;  %v268_v31 = vpop.trf.xlu0 }
  0xe0   : > { %883 = vmatmul.mubr.msk.f32.gmra.mxu0 %vm307_vm0, %v268_v31  ;;  %907 = vmatmul.mubr.msk.f32.gmra.mxu1 %vm307_vm0, %v300_v30 }
  0xe3   : > { %v301_v32 = vpop.trf.xlu1  ;;  %v269_v33 = vpop.trf.xlu0 }
  0xe4   : > { %885 = vmatprep.mubr.msk.f32.mxu0 %vm307_vm0, %v269_v33  ;;  %909 = vmatprep.mubr.msk.f32.mxu1 %vm307_vm0, %v301_v32 }
  0xe7   : > { %v302_v34 = vpop.trf.xlu1  ;;  %v270_v35 = vpop.trf.xlu0 }
  0xe8   : > { %886 = vmatmul.mubr.msk.f32.gmra.mxu0 %vm307_vm0, %v270_v35  ;;  %910 = vmatmul.mubr.msk.f32.gmra.mxu1 %vm307_vm0, %v302_v34 }
  0xeb   : > { %v303_v36 = vpop.trf.xlu1  ;;  %v271_v37 = vpop.trf.xlu0 }
  0xec   : > { %888 = vmatprep.mubr.msk.f32.mxu0 %vm307_vm0, %v271_v37  ;;  %912 = vmatprep.mubr.msk.f32.mxu1 %vm307_vm0, %v303_v36 }
  0xef   : > { %v304_v38 = vpop.trf.xlu1  ;;  %v272_v39 = vpop.trf.xlu0 }
  0xf0   : > { %889 = vmatmul.mubr.msk.f32.gmra.mxu0 %vm307_vm0, %v272_v39  ;;  %913 = vmatmul.mubr.msk.f32.gmra.mxu1 %vm307_vm0, %v304_v38 }
  0xf3   : > { %v305_v40 = vpop.trf.xlu1  ;;  %v273_v41 = vpop.trf.xlu0 }
  0xf4   : > { %891 = vmatprep.mubr.msk.f32.mxu0 %vm307_vm0, %v273_v41  ;;  %915 = vmatprep.mubr.msk.f32.mxu1 %vm307_vm0, %v305_v40 }
  0xf7   : > { %v306_v42 = vpop.trf.xlu1  ;;  %v274_v43 = vpop.trf.xlu0 }
  0xf8   : > { %892 = vmatmul.mubr.msk.f32.gmra.mxu0 %vm307_vm0, %v274_v43  ;;  %916 = vmatmul.mubr.msk.f32.gmra.mxu1 %vm307_vm0, %v306_v42 }
 0x180   : > { %v872_v45 = vpop.f32.mrf.mxu0  ;;  %v896_v46 = vpop.f32.mrf.mxu1 }
 0x181   : > { %v476_v47 = vadd.f32 %v872_v45, %v1348_v44  ;;  %v556_v48 = vadd.f32 %v896_v46, %v1348_v44 }
 0x182   : > { %v470_v49 = vpop.f32.mrf.mxu0  ;;  %v550_v50 = vpop.f32.mrf.mxu1 }
 0x183   : > { %630 = vst [vmem:[%s1352_s29 + $0x8] sm:$0xff] %v476_v47  ;;  %646 = vst [vmem:[%s1352_s29 + $0x88] sm:$0xff] %v556_v48  ;;  %v471_v51 = vadd.f32 %v1348_v44, %v470_v49  ;;  %v551_v52 = vadd.f32 %v1348_v44, %v550_v50 }
 0x185   : > { %629 = vst [vmem:[%s1352_s29] sm:$0xff] %v471_v51  ;;  %645 = vst [vmem:[%s1352_s29 + $0x80] sm:$0xff] %v551_v52 }
 0x188   : > { %v875_v53 = vpop.f32.mrf.mxu0  ;;  %v899_v54 = vpop.f32.mrf.mxu1 }
 0x189   : > { %v486_v55 = vadd.f32 %v875_v53, %v1348_v44  ;;  %v566_v56 = vadd.f32 %v899_v54, %v1348_v44 }
 0x18a   : > { %v480_v57 = vpop.f32.mrf.mxu0  ;;  %v560_v58 = vpop.f32.mrf.mxu1 }
 0x18b   : > { %632 = vst [vmem:[%s1352_s29 + $0x18] sm:$0xff] %v486_v55  ;;  %648 = vst [vmem:[%s1352_s29 + $0x98] sm:$0xff] %v566_v56  ;;  %v481_v59 = vadd.f32 %v1348_v44, %v480_v57  ;;  %v561_v60 = vadd.f32 %v1348_v44, %v560_v58 }
 0x18d   : > { %631 = vst [vmem:[%s1352_s29 + $0x10] sm:$0xff] %v481_v59  ;;  %647 = vst [vmem:[%s1352_s29 + $0x90] sm:$0xff] %v561_v60 }
 0x190   : > { %v878_v61 = vpop.f32.mrf.mxu0  ;;  %v902_v62 = vpop.f32.mrf.mxu1 }
 0x191   : > { %v496_v63 = vadd.f32 %v878_v61, %v1348_v44  ;;  %v576_v0 = vadd.f32 %v902_v62, %v1348_v44 }
 0x192   : > { %v490_v1 = vpop.f32.mrf.mxu0  ;;  %v570_v2 = vpop.f32.mrf.mxu1 }
 0x193   : > { %634 = vst [vmem:[%s1352_s29 + $0x28] sm:$0xff] %v496_v63  ;;  %650 = vst [vmem:[%s1352_s29 + $0xa8] sm:$0xff] %v576_v0  ;;  %v491_v3 = vadd.f32 %v1348_v44, %v490_v1  ;;  %v571_v4 = vadd.f32 %v1348_v44, %v570_v2 }
 0x195   : > { %633 = vst [vmem:[%s1352_s29 + $0x20] sm:$0xff] %v491_v3  ;;  %649 = vst [vmem:[%s1352_s29 + $0xa0] sm:$0xff] %v571_v4 }
 0x198   : > { %v881_v5 = vpop.f32.mrf.mxu0  ;;  %v905_v6 = vpop.f32.mrf.mxu1 }
 0x199   : > { %v506_v7 = vadd.f32 %v881_v5, %v1348_v44  ;;  %v586_v8 = vadd.f32 %v905_v6, %v1348_v44 }
 0x19a   : > { %v500_v9 = vpop.f32.mrf.mxu0  ;;  %v580_v10 = vpop.f32.mrf.mxu1 }
 0x19b   : > { %636 = vst [vmem:[%s1352_s29 + $0x38] sm:$0xff] %v506_v7  ;;  %652 = vst [vmem:[%s1352_s29 + $0xb8] sm:$0xff] %v586_v8  ;;  %v501_v11 = vadd.f32 %v1348_v44, %v500_v9  ;;  %v581_v12 = vadd.f32 %v1348_v44, %v580_v10 }
 0x19d   : > { %635 = vst [vmem:[%s1352_s29 + $0x30] sm:$0xff] %v501_v11  ;;  %651 = vst [vmem:[%s1352_s29 + $0xb0] sm:$0xff] %v581_v12 }
 0x1a0   : > { %v884_v13 = vpop.f32.mrf.mxu0  ;;  %v908_v14 = vpop.f32.mrf.mxu1 }
 0x1a1   : > { %v516_v15 = vadd.f32 %v884_v13, %v1348_v44  ;;  %v596_v16 = vadd.f32 %v908_v14, %v1348_v44 }
 0x1a2   : > { %v510_v17 = vpop.f32.mrf.mxu0  ;;  %v590_v18 = vpop.f32.mrf.mxu1 }
 0x1a3   : > { %638 = vst [vmem:[%s1352_s29 + $0x48] sm:$0xff] %v516_v15  ;;  %654 = vst [vmem:[%s1352_s29 + $0xc8] sm:$0xff] %v596_v16  ;;  %v511_v19 = vadd.f32 %v1348_v44, %v510_v17  ;;  %v591_v20 = vadd.f32 %v1348_v44, %v590_v18 }
 0x1a5   : > { %637 = vst [vmem:[%s1352_s29 + $0x40] sm:$0xff] %v511_v19  ;;  %653 = vst [vmem:[%s1352_s29 + $0xc0] sm:$0xff] %v591_v20 }
 0x1a8   : > { %v887_v21 = vpop.f32.mrf.mxu0  ;;  %v911_v22 = vpop.f32.mrf.mxu1 }
 0x1a9   : > { %v526_v23 = vadd.f32 %v887_v21, %v1348_v44  ;;  %v606_v24 = vadd.f32 %v911_v22, %v1348_v44 }
 0x1aa   : > { %v520_v25 = vpop.f32.mrf.mxu0  ;;  %v600_v26 = vpop.f32.mrf.mxu1 }
 0x1ab   : > { %640 = vst [vmem:[%s1352_s29 + $0x58] sm:$0xff] %v526_v23  ;;  %656 = vst [vmem:[%s1352_s29 + $0xd8] sm:$0xff] %v606_v24  ;;  %v521_v27 = vadd.f32 %v1348_v44, %v520_v25  ;;  %v601_v28 = vadd.f32 %v1348_v44, %v600_v26 }
 0x1ad   : > { %639 = vst [vmem:[%s1352_s29 + $0x50] sm:$0xff] %v521_v27  ;;  %655 = vst [vmem:[%s1352_s29 + $0xd0] sm:$0xff] %v601_v28 }
 0x1b0   : > { %v890_v29 = vpop.f32.mrf.mxu0  ;;  %v914_v30 = vpop.f32.mrf.mxu1 }
 0x1b1   : > { %v536_v31 = vadd.f32 %v890_v29, %v1348_v44  ;;  %v616_v32 = vadd.f32 %v914_v30, %v1348_v44 }
 0x1b2   : > { %v530_v33 = vpop.f32.mrf.mxu0  ;;  %v610_v34 = vpop.f32.mrf.mxu1 }
 0x1b3   : > { %642 = vst [vmem:[%s1352_s29 + $0x68] sm:$0xff] %v536_v31  ;;  %658 = vst [vmem:[%s1352_s29 + $0xe8] sm:$0xff] %v616_v32  ;;  %v531_v35 = vadd.f32 %v1348_v44, %v530_v33  ;;  %v611_v36 = vadd.f32 %v1348_v44, %v610_v34 }
 0x1b5   : > { %641 = vst [vmem:[%s1352_s29 + $0x60] sm:$0xff] %v531_v35  ;;  %657 = vst [vmem:[%s1352_s29 + $0xe0] sm:$0xff] %v611_v36 }
 0x1b8   : > { %v893_v37 = vpop.f32.mrf.mxu0  ;;  %v917_v38 = vpop.f32.mrf.mxu1 }
 0x1b9   : > { %v546_v39 = vadd.f32 %v893_v37, %v1348_v44  ;;  %v626_v40 = vadd.f32 %v917_v38, %v1348_v44 }
 0x1ba   : > { %v540_v41 = vpop.f32.mrf.mxu0  ;;  %v620_v42 = vpop.f32.mrf.mxu1 }
 0x1bb   : > { %644 = vst [vmem:[%s1352_s29 + $0x78] sm:$0xff] %v546_v39  ;;  %660 = vst [vmem:[%s1352_s29 + $0xf8] sm:$0xff] %v626_v40  ;;  %v541_v43 = vadd.f32 %v1348_v44, %v540_v41  ;;  %v621_v45 = vadd.f32 %v1348_v44, %v620_v42 }
 0x1bd   : > { %643 = vst [vmem:[%s1352_s29 + $0x70] sm:$0xff] %v541_v43  ;;  %659 = vst [vmem:[%s1352_s29 + $0xf0] sm:$0xff] %v621_v45 }
 0x1be   : > { %1073 = shalt.err (!%p1070_p5)
}
 0x1bf   : > { %s1074_s26 = scalar_lea.hbm %s1415_s7, 4096  ;;  %s1078_s20 = scalar_lea.hbm %s1474_s3, 8192 }
 0x1c0   : > { %p1075_p7 = scmp.ne.s32.totalorder %s1415_s7, %s1074_s26  ;;  %p1079_p9 = scmp.lt.s32.totalorder %s1415_s7, %s1474_s3 }
 0x1c1   : > { %p1080_p11 = scmp.lt.s32.totalorder %s1078_s20, %s1074_s26 }
 0x1c2   : > { %p1076_p6 = pnand %p1075_p7, %p1262_p13 }
 0x1c3   : > { %p1081_p12 = por %p1080_p11, %p1079_p9 }
 0x1c4   : > { %p1077_p4 = pneg %p1076_p6 }
 0x1c6   : > { %p1082_p1 = pnand %p1081_p12, %p1077_p4 }
 0x1c8   : > { %1085 = shalt.err (!%p1082_p1)
}
 0x1c9   : > { %s1153_s29 = smov 128   ;;  %s1154_s4 = smov 8  }
 0x1ca   : > { %932 = dma.vmem_to_hbm [thread:$0]  (%p1262_p13), %s1417_s21, 4096, %s1415_s7, %s662_s15, %s1153_s29, %s1153_s29, %s1154_s4  }
 0x1cb PF: > { %s692_s5 = sand.u32 1, %s1124_s12   ;;  %p1486_p8 = scmp.ne.s32.totalorder %s1479_s23, 0 }
 0x1cc   : > { %p1487_p10 = scmp.ge.s32.totalorder %s1144_s17, 2  ;;  %s693_s6 = scalar_lea.sflag [#allocation4], %s692_s5 }
 0x1ce   : > { %p943_p0 = pnand %p1487_p10, %p1486_p8 }
 0x1d0   : > { %p944_p2 = pneg %p943_p0 }
 0x1d2   : > { %1119 = dma.done.wait (%p944_p2), %s693_s6, 4096  }
 0x1d3   : > { %1121 = vsyncadd (%p944_p2), %s693_s6, 4294963200  ;;  %s20_s17 = sadd.s32 1, %s1144_s17   ;;  %s1488_s12 = smov %s1128_s13 }
 0x1d4   : > { %p17_p3 = scmp.ge.s32.totalorder %s20_s17, 4   ;;  %s1489_s13 = smov %s1132_s14 }
 0x1d5   : > { %s1490_s14 = smov %s1271_s19  ;;  %s1491_s15 = smov %s1140_s16 }
 0x1d6   : > { %s1492_s16 = smov %s1494_s28  ;;  %19 = sbr.rel (!%p17_p3) target bundleno = 7 (0x7), region = 81 }
 0x1db   :  { %698 = vsyncpa [#allocation3], 1 }
 0x1dc   :  { %700 = vsyncpa [#allocation3 + $0x1], 1 }
 0x1dd   :  { %701 = vsyncpa [#allocation6], 1 }
 0x1de   :  { %702 = vsyncpa [#allocation4], 1 }
 0x1df   :  { %704 = vsyncpa [#allocation4 + $0x1], 1 }

</bundles_post_ra>
